<compile_context>
chip_gen: v7x
topology: tpu7x:2x2x1
jax: 0.10.0
libtpu: 0.0.40
codegen_flags: <defaults>
</compile_context>

<pallas_src>
import functools
from typing import NamedTuple

import jax
import jax.numpy as jnp
from jax.experimental import pallas as pl
from jax.experimental.pallas import tpu as pltpu

_LANE = 128      # lane width (last dim)
_SUBLANE = 8     # sublane width (second-to-last dim)


def _round_up(x: int, m: int) -> int:
    return ((x + m - 1) // m) * m


def _actor_kernel(x_ref, w1_ref, b1_ref, w2_ref, b2_ref, w3_ref, b3_ref,
                  o_ref, *, max_action: float):
    # Whole MLP for one batch tile, fully in VMEM; f32 MXU accumulation throughout.
    x = x_ref[...]
    h1 = jnp.dot(x, w1_ref[...], preferred_element_type=jnp.float32) + b1_ref[...]
    h1 = jnp.maximum(h1, 0.0)                                     # ReLU
    h2 = jnp.dot(h1.astype(w2_ref.dtype), w2_ref[...],
                 preferred_element_type=jnp.float32) + b2_ref[...]
    h2 = jnp.maximum(h2, 0.0)                                     # ReLU
    a = jnp.dot(h2.astype(w3_ref.dtype), w3_ref[...],
                preferred_element_type=jnp.float32) + b3_ref[...]
    o_ref[...] = (jnp.tanh(a) * max_action).astype(o_ref.dtype)   # Tanh * max_action


class PreparedActorParams(NamedTuple):
    """Padded / pre-cast weights. Build once with prepare_actor_params and reuse."""
    w1: jax.Array   # (state_dim, H)  compute_dtype
    b1: jax.Array   # (1, H)          f32
    w2: jax.Array   # (H, H)          compute_dtype
    b2: jax.Array   # (1, H)          f32
    w3: jax.Array   # (H, A)          compute_dtype
    b3: jax.Array   # (1, A)          f32
    state_dim: int
    hidden_dim: int
    action_dim: int


def prepare_actor_params(params, compute_dtype=jnp.bfloat16) -> PreparedActorParams:
    """Pad hidden/action dims to 128 lanes and cast weights ONCE (hoisted out of the
    per-call path).  The first-layer contraction dim (state_dim) stays un-padded."""
    w1, b1, w2, b2, w3, b3 = params
    state_dim, hidden_dim = w1.shape
    action_dim = w3.shape[1]
    H = _round_up(hidden_dim, _LANE)
    A = _round_up(action_dim, _LANE)
    f32 = jnp.float32

    w1p = jnp.zeros((state_dim, H), f32).at[:, :hidden_dim].set(w1).astype(compute_dtype)
    b1p = jnp.zeros((1, H), f32).at[:, :hidden_dim].set(jnp.asarray(b1).reshape(1, -1))
    w2p = jnp.zeros((H, H), f32).at[:hidden_dim, :hidden_dim].set(w2).astype(compute_dtype)
    b2p = jnp.zeros((1, H), f32).at[:, :hidden_dim].set(jnp.asarray(b2).reshape(1, -1))
    w3p = jnp.zeros((H, A), f32).at[:hidden_dim, :action_dim].set(w3).astype(compute_dtype)
    b3p = jnp.zeros((1, A), f32).at[:, :action_dim].set(jnp.asarray(b3).reshape(1, -1))
    return PreparedActorParams(w1p, b1p, w2p, b2p, w3p, b3p,
                               int(state_dim), int(hidden_dim), int(action_dim))


def _choose_batch_tiling(B: int, batch_tile: int):
    """Tile the (sublane-rounded) batch so the grid has >=2 steps when possible
    (v7x megacore) without over-padding odd batch sizes."""
    B8 = _round_up(max(int(B), 1), _SUBLANE)
    half = _round_up(-(-B8 // 2), _SUBLANE)                 # ceil(B8/2), sublane-rounded
    tb = max(_SUBLANE, min(_round_up(batch_tile, _SUBLANE), half))
    Bp = _round_up(B8, tb)                                  # at most (tb-1) padded rows
    return tb, Bp


def actor_forward(state, prepared: PreparedActorParams, max_action: float,
                  *, batch_tile: int = 512):
    """state: [B, state_dim] f32 -> action: [B, action_dim] f32."""
    B, sdim = state.shape
    assert sdim == prepared.state_dim, "state_dim mismatch with prepared params"
    hdim, adim = prepared.hidden_dim, prepared.action_dim
    H = prepared.w2.shape[0]
    A = prepared.w3.shape[1]
    compute_dtype = prepared.w1.dtype

    tb, Bp = _choose_batch_tiling(B, batch_tile)
    grid = (Bp // tb,)

    # Only the batch dim is padded (single cheap pad); feature dim stays at state_dim.
    xp = state.astype(compute_dtype)
    if Bp != B:
        xp = jnp.pad(xp, ((0, Bp - B), (0, 0)))

    # Advisory cost from TRUE (unpadded) dims so XLA overlaps surrounding TD3 work.
    itm = jnp.dtype(compute_dtype).itemsize
    flops = 2 * B * (sdim * hdim + hdim * hdim + hdim * adim)
    bytes_accessed = (itm * B * sdim                                  # x stream
                      + itm * (sdim * hdim + hdim * hdim + hdim * adim)  # weights
                      + 4 * (2 * hdim + adim)                         # biases
                      + 4 * B * adim)                                 # output
    cost = pl.CostEstimate(flops=flops, transcendentals=B * adim,
                           bytes_accessed=bytes_accessed)

    # Note: max_action is baked in via partial -> changing it retraces (not a bug).
    kernel = functools.partial(_actor_kernel, max_action=float(max_action))

    out_padded = pl.pallas_call(
        kernel,
        out_shape=jax.ShapeDtypeStruct((Bp, A), jnp.float32),
        grid_spec=pltpu.PrefetchScalarGridSpec(
            num_scalar_prefetch=0,
            grid=grid,
            in_specs=[
                # x streamed per batch tile; last block dim == full array dim (legal).
                pl.BlockSpec((tb, sdim), lambda i: (i, 0)),
                # Constant block index (0,0) every step -> Pallas keeps these
                # VMEM-resident and skips redundant DMAs across grid steps.
                pl.BlockSpec((sdim, H), lambda i: (0, 0)),
                pl.BlockSpec((1, H), lambda i: (0, 0)),
                pl.BlockSpec((H, H), lambda i: (0, 0)),
                pl.BlockSpec((1, H), lambda i: (0, 0)),
                pl.BlockSpec((H, A), lambda i: (0, 0)),
                pl.BlockSpec((1, A), lambda i: (0, 0)),
            ],
            out_specs=pl.BlockSpec((tb, A), lambda i: (i, 0)),   # lane-dense output
        ),
        compiler_params=pltpu.CompilerParams(
            dimension_semantics=("parallel",)),   # shard batch tiles across TCs (v7x)
        cost_estimate=cost,
    )(xp, prepared.w1, prepared.b1, prepared.w2, prepared.b2, prepared.w3, prepared.b3)

    # Slice padded batch rows / padded action lanes off outside the kernel.
    return out_padded[:B, :adim]


def _xavier_uniform(key, fan_in, fan_out, dtype=jnp.float32):
    # Same bound as torch.nn.init.xavier_uniform_ (gain=1.0), matching Actor._init_weights.
    limit = (6.0 / (fan_in + fan_out)) ** 0.5
    return jax.random.uniform(key, (fan_in, fan_out), dtype, minval=-limit, maxval=limit)


def init_actor_params(key, state_dim, action_dim, hidden_dim):
    k1, k2, k3 = jax.random.split(key, 3)
    w1 = _xavier_uniform(k1, state_dim, hidden_dim)
    b1 = jnp.zeros((1, hidden_dim), jnp.float32)
    w2 = _xavier_uniform(k2, hidden_dim, hidden_dim)
    b2 = jnp.zeros((1, hidden_dim), jnp.float32)
    w3 = _xavier_uniform(k3, hidden_dim, action_dim)
    b3 = jnp.zeros((1, action_dim), jnp.float32)
    return (w1, b1, w2, b2, w3, b3)


def actor_forward_ref(state, params, max_action):
    w1, b1, w2, b2, w3, b3 = params
    h1 = jnp.maximum(state @ w1 + b1, 0.0)
    h2 = jnp.maximum(h1 @ w2 + b2, 0.0)
    return jnp.tanh(h2 @ w3 + b3) * max_action


if __name__ == "__main__":
    # HalfCheetah-like small dims: state_dim=17, action_dim=6, hidden=32, batch=2.
    batch, state_dim, action_dim, hidden_dim = 2, 17, 6, 32
    max_action = 1.0

    key = jax.random.PRNGKey(0)
    k_params, k_state = jax.random.split(key)
    params = init_actor_params(k_params, state_dim, action_dim, hidden_dim)
    state = jax.random.normal(k_state, (batch, state_dim), jnp.float32)
    ref = actor_forward_ref(state, params, max_action)

    # Pad/cast weights ONCE; reuse across all forward calls.
    prep_f32 = prepare_actor_params(params, compute_dtype=jnp.float32)
    prep_bf16 = prepare_actor_params(params)  # default bf16 streaming path

    # f32 path: bit-accurate vs the JAX reference.
    out_f32 = jax.block_until_ready(actor_forward(state, prep_f32, max_action))
    assert out_f32.shape == (batch, action_dim)
    assert jnp.allclose(out_f32, ref, atol=1e-5, rtol=1e-5), "mismatch (f32)"

    # bf16 streaming path: looser tolerance (f32 accumulation, tanh output in [-1,1]).
    out_bf16 = jax.block_until_ready(actor_forward(state, prep_bf16, max_action))
    assert out_bf16.shape == (batch, action_dim)
    assert jnp.allclose(out_bf16, ref, atol=5e-2, rtol=0.0), "mismatch (bf16)"

    # Training-sized odd batch exercises the multi-tile pipelined path (grid >= 2)
    # without the old round_up(B, 256)-style over-padding.
    big_state = jax.random.normal(jax.random.PRNGKey(1), (300, state_dim), jnp.float32)
    big_ref = actor_forward_ref(big_state, params, max_action)

    big_f32 = jax.block_until_ready(actor_forward(big_state, prep_f32, max_action))
    assert big_f32.shape == (300, action_dim)
    assert jnp.allclose(big_f32, big_ref, atol=1e-5, rtol=1e-5), "mismatch (big f32)"

    big_bf16 = jax.block_until_ready(actor_forward(big_state, prep_bf16, max_action))
    assert jnp.allclose(big_bf16, big_ref, atol=5e-2, rtol=0.0), "mismatch (big bf16)"

    print("KERNEL_OK")
</pallas_src>

<mosaic_0001>
module attributes {stable_mosaic.version = 11 : i64} {
  func.func @_actor_kernel(%arg0: i32, %arg1: memref<8x17xf32, #tpu.memory_space<vmem>>, %arg2: memref<17x128xf32, #tpu.memory_space<vmem>>, %arg3: memref<1x128xf32, #tpu.memory_space<vmem>>, %arg4: memref<128x128xf32, #tpu.memory_space<vmem>>, %arg5: memref<1x128xf32, #tpu.memory_space<vmem>>, %arg6: memref<128x128xf32, #tpu.memory_space<vmem>>, %arg7: memref<1x128xf32, #tpu.memory_space<vmem>>, %arg8: memref<8x128xf32, #tpu.memory_space<vmem>>) attributes {dimension_semantics = [#tpu.dimension_semantics<parallel>], iteration_bounds = array<i64: 1>, scalar_prefetch = 0 : i64, scratch_operands = 0 : i64, tpu.core_type = #tpu.core_type<tc>, window_params = [{transform_indices = @transform_0, window_bounds = array<i64: 8, 17>}, {pipeline_mode = #tpu.pipeline_mode<synchronous>, transform_indices = @transform_1, window_bounds = array<i64: 17, 128>}, {pipeline_mode = #tpu.pipeline_mode<synchronous>, transform_indices = @transform_2, window_bounds = array<i64: 1, 128>}, {pipeline_mode = #tpu.pipeline_mode<synchronous>, transform_indices = @transform_3, window_bounds = array<i64: 128, 128>}, {pipeline_mode = #tpu.pipeline_mode<synchronous>, transform_indices = @transform_4, window_bounds = array<i64: 1, 128>}, {pipeline_mode = #tpu.pipeline_mode<synchronous>, transform_indices = @transform_5, window_bounds = array<i64: 128, 128>}, {pipeline_mode = #tpu.pipeline_mode<synchronous>, transform_indices = @transform_6, window_bounds = array<i64: 1, 128>}, {transform_indices = @transform_7, window_bounds = array<i64: 8, 128>}]} {
    %c0 = arith.constant 0 : index
    %c0_0 = arith.constant 0 : index
    %0 = vector.load %arg1[%c0, %c0_0] : memref<8x17xf32, #tpu.memory_space<vmem>>, vector<8x17xf32>
    %c0_1 = arith.constant 0 : index
    %c0_2 = arith.constant 0 : index
    %1 = vector.load %arg2[%c0_1, %c0_2] : memref<17x128xf32, #tpu.memory_space<vmem>>, vector<17x128xf32>
    %cst = arith.constant dense<0.000000e+00> : vector<8x128xf32>
    %2 = tpu.matmul %0, %1, %cst {dimension_numbers = #tpu.dot_dimension_numbers<[1], [0], [0], [1], [0, 0, 1, 1], [], []>} : vector<8x17xf32>, vector<17x128xf32>, vector<8x128xf32> -> vector<8x128xf32>
    %c0_3 = arith.constant 0 : index
    %c0_4 = arith.constant 0 : index
    %3 = vector.load %arg3[%c0_3, %c0_4] : memref<1x128xf32, #tpu.memory_space<vmem>>, vector<1x128xf32>
    %4 = vector.broadcast %3 : vector<1x128xf32> to vector<8x128xf32>
    %5 = arith.addf %2, %4 : vector<8x128xf32>
    %cst_5 = arith.constant 0.000000e+00 : f32
    %6 = vector.broadcast %cst_5 : f32 to vector<8x128xf32>
    %7 = arith.maximumf %5, %6 : vector<8x128xf32>
    %c0_6 = arith.constant 0 : index
    %c0_7 = arith.constant 0 : index
    %8 = vector.load %arg4[%c0_6, %c0_7] : memref<128x128xf32, #tpu.memory_space<vmem>>, vector<128x128xf32>
    %cst_8 = arith.constant dense<0.000000e+00> : vector<8x128xf32>
    %9 = tpu.matmul %7, %8, %cst_8 {dimension_numbers = #tpu.dot_dimension_numbers<[1], [0], [0], [1], [0, 0, 1, 1], [], []>} : vector<8x128xf32>, vector<128x128xf32>, vector<8x128xf32> -> vector<8x128xf32>
    %c0_9 = arith.constant 0 : index
    %c0_10 = arith.constant 0 : index
    %10 = vector.load %arg5[%c0_9, %c0_10] : memref<1x128xf32, #tpu.memory_space<vmem>>, vector<1x128xf32>
    %11 = vector.broadcast %10 : vector<1x128xf32> to vector<8x128xf32>
    %12 = arith.addf %9, %11 : vector<8x128xf32>
    %cst_11 = arith.constant 0.000000e+00 : f32
    %13 = vector.broadcast %cst_11 : f32 to vector<8x128xf32>
    %14 = arith.maximumf %12, %13 : vector<8x128xf32>
    %c0_12 = arith.constant 0 : index
    %c0_13 = arith.constant 0 : index
    %15 = vector.load %arg6[%c0_12, %c0_13] : memref<128x128xf32, #tpu.memory_space<vmem>>, vector<128x128xf32>
    %cst_14 = arith.constant dense<0.000000e+00> : vector<8x128xf32>
    %16 = tpu.matmul %14, %15, %cst_14 {dimension_numbers = #tpu.dot_dimension_numbers<[1], [0], [0], [1], [0, 0, 1, 1], [], []>} : vector<8x128xf32>, vector<128x128xf32>, vector<8x128xf32> -> vector<8x128xf32>
    %c0_15 = arith.constant 0 : index
    %c0_16 = arith.constant 0 : index
    %17 = vector.load %arg7[%c0_15, %c0_16] : memref<1x128xf32, #tpu.memory_space<vmem>>, vector<1x128xf32>
    %18 = vector.broadcast %17 : vector<1x128xf32> to vector<8x128xf32>
    %19 = arith.addf %16, %18 : vector<8x128xf32>
    %20 = math.tanh %19 : vector<8x128xf32>
    %cst_17 = arith.constant 1.000000e+00 : f32
    %21 = vector.broadcast %cst_17 : f32 to vector<8x128xf32>
    %22 = arith.mulf %20, %21 : vector<8x128xf32>
    %c0_18 = arith.constant 0 : index
    %c0_19 = arith.constant 0 : index
    %23 = vector.load %arg8[%c0_18, %c0_19] : memref<8x128xf32, #tpu.memory_space<vmem>>, vector<8x128xf32>
    tpu.vector_store %arg8[%c0_18, %c0_19], %22 {strides = array<i32>} : memref<8x128xf32, #tpu.memory_space<vmem>>, vector<8x128xf32>,
    return
  }
  func.func @transform_0(%arg0: i32) -> (i32, i32) {
    %c0_i32 = arith.constant 0 : i32
    %c0_i32_0 = arith.constant 0 : i32
    return %arg0, %c0_i32 : i32, i32
  }
  func.func @transform_1(%arg0: i32) -> (i32, i32) {
    %c0_i32 = arith.constant 0 : i32
    %c0_i32_0 = arith.constant 0 : i32
    %c0_i32_1 = arith.constant 0 : i32
    return %c0_i32, %c0_i32_0 : i32, i32
  }
  func.func @transform_2(%arg0: i32) -> (i32, i32) {
    %c0_i32 = arith.constant 0 : i32
    %c0_i32_0 = arith.constant 0 : i32
    %c0_i32_1 = arith.constant 0 : i32
    return %c0_i32, %c0_i32_0 : i32, i32
  }
  func.func @transform_3(%arg0: i32) -> (i32, i32) {
    %c0_i32 = arith.constant 0 : i32
    %c0_i32_0 = arith.constant 0 : i32
    %c0_i32_1 = arith.constant 0 : i32
    return %c0_i32, %c0_i32_0 : i32, i32
  }
  func.func @transform_4(%arg0: i32) -> (i32, i32) {
    %c0_i32 = arith.constant 0 : i32
    %c0_i32_0 = arith.constant 0 : i32
    %c0_i32_1 = arith.constant 0 : i32
    return %c0_i32, %c0_i32_0 : i32, i32
  }
  func.func @transform_5(%arg0: i32) -> (i32, i32) {
    %c0_i32 = arith.constant 0 : i32
    %c0_i32_0 = arith.constant 0 : i32
    %c0_i32_1 = arith.constant 0 : i32
    return %c0_i32, %c0_i32_0 : i32, i32
  }
  func.func @transform_6(%arg0: i32) -> (i32, i32) {
    %c0_i32 = arith.constant 0 : i32
    %c0_i32_0 = arith.constant 0 : i32
    %c0_i32_1 = arith.constant 0 : i32
    return %c0_i32, %c0_i32_0 : i32, i32
  }
  func.func @transform_7(%arg0: i32) -> (i32, i32) {
    %c0_i32 = arith.constant 0 : i32
    %c0_i32_0 = arith.constant 0 : i32
    return %arg0, %c0_i32 : i32, i32
  }
}

</mosaic_0001>

<bundles_post_ra>
// kernel: tpu_custom_call.1
= control target key start
LH: loop header
LB: loop body
LE: loop exit
PB: predicated region body
PF: predicated region fallthrough
CT: control target
= control target key end

     0   :  { %12 = vsyncpa [#allocation3], 0  ;;  %s827_s0 = inlined_call_operand.hbm [shape: f32[8,17], index: 0, kind: input, shape index: {}]   ;;  %s828_s1 = inlined_call_operand.hbm [shape: f32[17,128], index: 1, kind: input, shape index: {}]   ;;  %s829_s2 = inlined_call_operand.vmem [shape: f32[1,128], index: 2, kind: input, shape index: {}]   ;;  %s830_s3 = inlined_call_operand.hbm [shape: f32[128,128], index: 3, kind: input, shape index: {}]   ;;  %s831_s4 = inlined_call_operand.vmem [shape: f32[1,128], index: 4, kind: input, shape index: {}]   ;;  %s832_s5 = inlined_call_operand.hbm [shape: f32[128,128], index: 5, kind: input, shape index: {}]   ;;  %s833_s6 = inlined_call_operand.vmem [shape: f32[1,128], index: 6, kind: input, shape index: {}]   ;;  %s834_s7 = inlined_call_operand.hbm [shape: f32[8,128], index: 7, kind: output, shape index: {}]  }
   0x1   :  { %13 = vsyncpa [#allocation6], 0 }
   0x2   :  { %14 = vsyncpa [#allocation9], 0 }
   0x3   :  { %15 = vsyncpa [#allocation4], 0  ;;  %s679_s24 = smov [#allocation5]   ;;  %s561_s28 = scalar_lea.hbm %s828_s1, 384 }
   0x4   :  { %s31_s25 = sshll.u32 %s679_s24, 4  ;;  %p562_p0 = scmp.ne.s32.totalorder %s828_s1, %s561_s28  ;;  %s32_s25 = int_to_ptr.vmem [resolvable:$true] %s31_s25 }
   0x5   :  { %p565_p1 = scmp.lt.u32.totalorder %s561_s28, %s828_s1 }
   0x7   :  { %p567_p2 = pnand %p565_p1, %p562_p0 }
   0x9   :  { %570 = shalt.err (!%p567_p2)
}
   0xa   :  { %s571_s10 = scalar_lea.vmem %s32_s25, 384  ;;  %p576_p4 = scmp.lt.s32.totalorder %s32_s25, %s32_s25 }
   0xb   :  { %p572_p3 = scmp.ne.s32.totalorder %s32_s25, %s571_s10  ;;  %p577_p5 = scmp.lt.s32.totalorder %s571_s10, %s571_s10 }
   0xd   :  { %p578_p6 = por %p577_p5, %p576_p4 }
   0xf   :  { %p579_p7 = pnand %p578_p6, %p572_p3 }
  0x11   :  { %582 = shalt.err (!%p579_p7)
}
  0x12   :  { %s680_s11 = smov 128   ;;  %s681_s12 = smov 8  }
  0x13   :  { %37 = dma.hbm_to_vmem [thread:$0]  %s828_s1, 384, %s32_s25, [#allocation6], %s680_s11, %s680_s11, %s681_s12  }
  0x14   :  { %s682_s15 = smov [#allocation2]   ;;  %s683_s17 = smov [#allocation7]  }
  0x15   :  { %s22_s16 = sshll.u32 %s682_s15, 4  ;;  %s45_s18 = sshll.u32 %s683_s17, 4  ;;  %s23_s16 = int_to_ptr.vmem [resolvable:$true] %s22_s16  ;;  %s46_s18 = int_to_ptr.vmem [resolvable:$true] %s45_s18 }
  0x16   :  { %s583_s21 = scalar_lea.hbm %s827_s0, 128 }
  0x17   :  { %p584_p8 = scmp.ne.s32.totalorder %s827_s0, %s583_s21  ;;  %p587_p9 = scmp.lt.u32.totalorder %s583_s21, %s827_s0 }
  0x19   :  { %p589_p10 = pnand %p587_p9, %p584_p8 }
  0x1b   :  { %592 = shalt.err (!%p589_p10)
}
  0x1c   :  { %s593_s1 = scalar_lea.vmem %s23_s16, 128  ;;  %p598_p12 = scmp.lt.s32.totalorder %s23_s16, %s23_s16 }
  0x1d   :  { %p594_p11 = scmp.ne.s32.totalorder %s23_s16, %s593_s1  ;;  %p599_p13 = scmp.lt.s32.totalorder %s593_s1, %s593_s1 }
  0x1f   :  { %p600_p0 = por %p599_p13, %p598_p12 }
  0x21   :  { %p601_p1 = pnand %p600_p0, %p594_p11 }
  0x23   :  { %604 = shalt.err (!%p601_p1)
}
  0x24   :  { %25 = dma.hbm_to_vmem [thread:$0]  %s827_s0, 128, %s23_s16, [#allocation3]  }
  0x25   :  { %s605_s30 = scalar_lea.hbm %s830_s3, 2048 }
  0x26   :  { %p606_p2 = scmp.ne.s32.totalorder %s830_s3, %s605_s30  ;;  %p609_p3 = scmp.lt.u32.totalorder %s605_s30, %s830_s3 }
  0x28   :  { %p611_p4 = pnand %p609_p3, %p606_p2 }
  0x2a   :  { %614 = shalt.err (!%p611_p4)
}
  0x2b   :  { %s615_s14 = scalar_lea.vmem %s46_s18, 2048  ;;  %p620_p6 = scmp.lt.s32.totalorder %s46_s18, %s46_s18 }
  0x2c   :  { %p616_p5 = scmp.ne.s32.totalorder %s46_s18, %s615_s14  ;;  %p621_p7 = scmp.lt.s32.totalorder %s615_s14, %s615_s14 }
  0x2e   :  { %p622_p8 = por %p621_p7, %p620_p6 }
  0x30   :  { %p623_p9 = pnand %p622_p8, %p616_p5 }
  0x32   :  { %626 = shalt.err (!%p623_p9)
}
  0x33   :  { %51 = dma.hbm_to_vmem [thread:$0]  %s830_s3, 2048, %s46_s18, [#allocation6], %s680_s11, %s680_s11, %s681_s12  }
  0x34   :  { %s684_s16 = smov [#allocation8]   ;;  %s627_s21 = scalar_lea.hbm %s832_s5, 2048 }
  0x35   :  { %s59_s17 = sshll.u32 %s684_s16, 4  ;;  %p628_p10 = scmp.ne.s32.totalorder %s832_s5, %s627_s21  ;;  %s60_s17 = int_to_ptr.vmem [resolvable:$true] %s59_s17 }
  0x36   :  { %p631_p11 = scmp.lt.u32.totalorder %s627_s21, %s832_s5 }
  0x38   :  { %p633_p12 = pnand %p631_p11, %p628_p10 }
  0x3a   :  { %636 = shalt.err (!%p633_p12)
}
  0x3b   :  { %s637_s1 = scalar_lea.vmem %s60_s17, 2048  ;;  %p642_p0 = scmp.lt.s32.totalorder %s60_s17, %s60_s17 }
  0x3c   :  { %p638_p13 = scmp.ne.s32.totalorder %s60_s17, %s637_s1  ;;  %p643_p1 = scmp.lt.s32.totalorder %s637_s1, %s637_s1 }
  0x3e   :  { %p644_p2 = por %p643_p1, %p642_p0 }
  0x40   :  { %p645_p3 = pnand %p644_p2, %p638_p13 }
  0x42   :  { %648 = shalt.err (!%p645_p3)
}
  0x43   :  { %65 = dma.hbm_to_vmem [thread:$0]  %s832_s5, 2048, %s60_s17, [#allocation9], %s680_s11, %s680_s11, %s681_s12  }
  0x44   :  { %671 = dma.done.wait [#allocation3], 128  }
  0x45   :  { %672 = vsyncadd [#allocation3], 4294967168 }
  0x46   :  { %673 = dma.done.wait [#allocation6], 2432  }
  0x47   :  { %674 = vsyncadd [#allocation6], 4294964864 }
  0x48   :  { %675 = dma.done.wait [#allocation9], 2048  }
  0x49   :  { %676 = vsyncadd [#allocation9], 4294965248  ;;  %v685_v0 = vmov 0.0|0.0   ;;  %vm686_vm0 = vmmov 0   ;;  %v687_v1 = vmov 0.0   ;;  %v81_v2 = vld [vmem:[#allocation5] sm:$0xff] }
  0x4a   :  { %498 = vmatprep.subr.bf16.mxu0 %v685_v0  ;;  %425 = vmatprep.mubr.msk.f32.mxu0 %vm686_vm0, %v687_v1  ;;  %v82_v3 = vld [vmem:[#allocation5 + $0x8] sm:$0xff]  ;;  %v170_v5 = vld [vmem:[#allocation7] sm:$0xff]  ;;  %v171_v6 = vld [vmem:[#allocation7 + $0x8] sm:$0xff]  ;;  %vm95_vm1 = vcmask 1040384   ;;  %vm91_vm2 = vcmask 138240   ;;  %s688_s28 = smov [#allocation10]  }
  0x4b   :  { %501 = vmatprep.subr.bf16.mxu1 %v685_v0  ;;  %460 = vmatprep.mubr.msk.f32.mxu1 %vm686_vm0, %v687_v1  ;;  %v499_v4 = vpack.c.bf16 %v82_v3, %v81_v2  ;;  %v502_v7 = vpack.c.bf16 %v171_v6, %v170_v5  ;;  %v172_v8 = vld [vmem:[#allocation7 + $0x10] sm:$0xff]  ;;  %v173_v9 = vld [vmem:[#allocation7 + $0x18] sm:$0xff]  ;;  %v80_v12 = vld [vmem:[#allocation2] sm:$0xff]  ;;  %s365_s29 = sshll.u32 %s688_s28, 4  ;;  %s366_s29 = int_to_ptr.vmem [resolvable:$true] %s365_s29 }
  0x4c   :  { %v83_v10 = vld [vmem:[#allocation5 + $0x10] sm:$0x1]  ;;  %v505_v11 = vpack.c.bf16 %v173_v9, %v172_v8  ;;  %v174_v13 = vld [vmem:[#allocation7 + $0x20] sm:$0xff]  ;;  %v175_v14 = vld [vmem:[#allocation7 + $0x28] sm:$0xff]  ;;  %s649_s30 = scalar_lea.vmem %s366_s29, 128  ;;  %p654_p5 = scmp.lt.s32.totalorder %s366_s29, %s366_s29 }
  0x4d   :  { %500 = vmatpush3.bf16.msra.mxu0 %v499_v4  ;;  %503 = vmatpush3.bf16.msra.mxu1 %v502_v7  ;;  %v508_v15 = vpack.c.bf16 %v175_v14, %v174_v13  ;;  %v176_v16 = vld [vmem:[#allocation7 + $0x30] sm:$0xff]  ;;  %v177_v17 = vld [vmem:[#allocation7 + $0x38] sm:$0xff]  ;;  %v178_v19 = vld [vmem:[#allocation7 + $0x40] sm:$0xff]  ;;  %p650_p4 = scmp.ne.s32.totalorder %s366_s29, %s649_s30  ;;  %p655_p6 = scmp.lt.s32.totalorder %s649_s30, %s649_s30 }
  0x4e   :  { %423 = vmatprep.subr.mxu0 %v687_v1  ;;  %504 = vmatprep.subr.bf16.mxu1 %v685_v0  ;;  %v511_v18 = vpack.c.bf16 %v177_v17, %v176_v16  ;;  %v179_v20 = vld [vmem:[#allocation7 + $0x48] sm:$0xff]  ;;  %v180_v22 = vld [vmem:[#allocation7 + $0x50] sm:$0xff]  ;;  %v181_v23 = vld [vmem:[#allocation7 + $0x58] sm:$0xff] }
  0x4f   :  { %v514_v21 = vpack.c.bf16 %v179_v20, %v178_v19  ;;  %v517_v24 = vpack.c.bf16 %v181_v23, %v180_v22  ;;  %v182_v25 = vld [vmem:[#allocation7 + $0x60] sm:$0xff]  ;;  %v183_v26 = vld [vmem:[#allocation7 + $0x68] sm:$0xff]  ;;  %v184_v28 = vld [vmem:[#allocation7 + $0x70] sm:$0xff]  ;;  %p656_p7 = por %p655_p6, %p654_p5 }
  0x50   :  { %v520_v27 = vpack.c.bf16 %v183_v26, %v182_v25  ;;  %v185_v29 = vld [vmem:[#allocation7 + $0x78] sm:$0xff]  ;;  %v264_v31 = vld [vmem:[#allocation8] sm:$0xff]  ;;  %v265_v32 = vld [vmem:[#allocation8 + $0x8] sm:$0xff] }
  0x51   :  { %424 = vmatpush3.msk.msra.mxu0 %vm95_vm1, %v83_v10  ;;  %506 = vmatpush3.bf16.msra.mxu1 %v505_v11  ;;  %v523_v30 = vpack.c.bf16 %v185_v29, %v184_v28  ;;  %v266_v33 = vld [vmem:[#allocation8 + $0x10] sm:$0xff]  ;;  %v526_v34 = vpack.c.bf16 %v265_v32, %v264_v31  ;;  %v267_v35 = vld [vmem:[#allocation8 + $0x18] sm:$0xff]  ;;  %v268_v37 = vld [vmem:[#allocation8 + $0x20] sm:$0xff]  ;;  %p657_p8 = pnand %p656_p7, %p650_p4 }
  0x52   :  { %426 = vmatmul.mubr.msk.f32.vlgmr.msra.gmra.mrb[0].mxu0 %vm91_vm2, %v80_v12  ;;  %507 = vmatprep.subr.bf16.mxu1 %v685_v0  ;;  %v529_v36 = vpack.c.bf16 %v267_v35, %v266_v33  ;;  %v269_v38 = vld [vmem:[#allocation8 + $0x28] sm:$0xff]  ;;  %v270_v40 = vld [vmem:[#allocation8 + $0x30] sm:$0xff]  ;;  %v271_v41 = vld [vmem:[#allocation8 + $0x38] sm:$0xff] }
  0x53   :  { %525 = vmatprep.subr.bf16.mxu0 %v685_v0  ;;  %495 = vmatprep.mubr.msk.f32.mxu0 %vm686_vm0, %v687_v1  ;;  %v532_v39 = vpack.c.bf16 %v269_v38, %v268_v37  ;;  %v535_v42 = vpack.c.bf16 %v271_v41, %v270_v40  ;;  %v272_v43 = vld [vmem:[#allocation8 + $0x40] sm:$0xff]  ;;  %v273_v44 = vld [vmem:[#allocation8 + $0x48] sm:$0xff]  ;;  %v274_v46 = vld [vmem:[#allocation8 + $0x50] sm:$0xff] }
  0x54   :  { %527 = vmatpush3.bf16.msra.mxu0 %v526_v34  ;;  %v538_v45 = vpack.c.bf16 %v273_v44, %v272_v43  ;;  %v275_v47 = vld [vmem:[#allocation8 + $0x58] sm:$0xff]  ;;  %v276_v49 = vld [vmem:[#allocation8 + $0x60] sm:$0xff]  ;;  %v277_v50 = vld [vmem:[#allocation8 + $0x68] sm:$0xff] }
  0x55   :  { %509 = vmatpush3.bf16.msra.mxu1 %v508_v15  ;;  %528 = vmatprep.subr.bf16.mxu0 %v685_v0  ;;  %v541_v48 = vpack.c.bf16 %v275_v47, %v274_v46  ;;  %v544_v51 = vpack.c.bf16 %v277_v50, %v276_v49  ;;  %v376_v52 = vld [vmem:[%s829_s2] ss:$0 sm:$0xff]  ;;  %v278_v57 = vld [vmem:[#allocation8 + $0x70] sm:$0xff]  ;;  %v279_v58 = vld [vmem:[#allocation8 + $0x78] sm:$0xff] }
  0x56   :  { %510 = vmatprep.subr.bf16.mxu1 %v685_v0  ;;  %v547_v59 = vpack.c.bf16 %v279_v58, %v278_v57  ;;  %v379_v60 = vld [vmem:[%s831_s4] ss:$0 sm:$0xff] }
  0x57   :  { %v380_v1 = vld [vmem:[%s833_s6] ss:$0 sm:$0xff] }
  0x58   :  { %530 = vmatpush3.bf16.msra.mxu0 %v529_v36 }
  0x59   :  { %512 = vmatpush3.bf16.msra.mxu1 %v511_v18  ;;  %531 = vmatprep.subr.bf16.mxu0 %v685_v0 }
  0x5a   :  { %513 = vmatprep.subr.bf16.mxu1 %v685_v0 }
  0x5c   :  { %533 = vmatpush3.bf16.msra.mxu0 %v532_v39 }
  0x5d   :  { %515 = vmatpush3.bf16.msra.mxu1 %v514_v21  ;;  %534 = vmatprep.subr.bf16.mxu0 %v685_v0 }
  0x5e   :  { %516 = vmatprep.subr.bf16.mxu1 %v685_v0 }
  0x60   :  { %536 = vmatpush3.bf16.msra.mxu0 %v535_v42 }
  0x61   :  { %518 = vmatpush3.bf16.msra.mxu1 %v517_v24  ;;  %537 = vmatprep.subr.bf16.mxu0 %v685_v0 }
  0x62   :  { %519 = vmatprep.subr.bf16.mxu1 %v685_v0 }
  0x64   :  { %539 = vmatpush3.bf16.msra.mxu0 %v538_v45 }
  0x65   :  { %521 = vmatpush3.bf16.msra.mxu1 %v520_v27  ;;  %540 = vmatprep.subr.bf16.mxu0 %v685_v0 }
  0x66   :  { %522 = vmatprep.subr.bf16.mxu1 %v685_v0 }
  0x68   :  { %542 = vmatpush3.bf16.msra.mxu0 %v541_v48 }
  0x69   :  { %524 = vmatpush3.bf16.msra.mxu1 %v523_v30  ;;  %543 = vmatprep.subr.bf16.mxu0 %v685_v0 }
  0x6c   :  { %545 = vmatpush3.bf16.msra.mxu0 %v544_v51 }
  0x6d   :  { %546 = vmatprep.subr.bf16.mxu0 %v685_v0 }
  0x70   :  { %548 = vmatpush3.bf16.msra.mxu0 %v547_v59 }
 0x125   :  { %v165_v53 = vpop.f32.mrb[0].mxu0 }
 0x126   :  { %v166_v54 = vadd.f32 %v376_v52, %v165_v53  ;;  %v427_v55 = vpop.f32.mrb[1].mxu0 }
 0x128   :  { %v169_v56 = vmax.f32 %v166_v54, 0.0 }
 0x12a   :  { %461 = vmatmul.mubr.f32.vlgmr.msra.gmra.mrb[0].mxu1 %v169_v56 }
 0x1fd   :  { %v259_v61 = vpop.f32.mrb[0].mxu1 }
 0x1fe   :  { %v260_v62 = vadd.f32 %v379_v60, %v259_v61  ;;  %v462_v63 = vpop.f32.mrb[1].mxu1 }
 0x200   :  { %v263_v0 = vmax.f32 %v260_v62, 0.0 }
 0x202   :  { %496 = vmatmul.mubr.f32.vlgmr.msra.gmra.mrb[2].mxu0 %v263_v0 }
 0x2d5   :  { %v353_v2 = vpop.f32.mrb[2].mxu0 }
 0x2d6   :  { %v354_v3 = vadd.f32 %v380_v1, %v353_v2  ;;  %v497_v4 = vpop.f32.mrb[3].mxu0 }
 0x2d8   :  { %559 = vtanh.f32 %v354_v3 }
 0x2e2   :  { %v560_v5 = vpop.eup %559 }
 0x2e3   :  { %358 = vst [vmem:[#allocation10] sm:$0xff] %v560_v5 }
 0x2e4   :  { %660 = shalt.err (!%p657_p8)
}
 0x2e5   :  { %s661_s6 = scalar_lea.hbm %s834_s7, 128 }
 0x2e6   :  { %p662_p9 = scmp.ne.s32.totalorder %s834_s7, %s661_s6  ;;  %p665_p10 = scmp.lt.u32.totalorder %s661_s6, %s834_s7 }
 0x2e8   :  { %p667_p11 = pnand %p665_p10, %p662_p9 }
 0x2ea   :  { %670 = shalt.err (!%p667_p11)
}
 0x2eb   :  { %368 = dma.vmem_to_hbm [thread:$0]  %s366_s29, 128, %s834_s7, [#allocation4]  }
 0x2ec   :  { %677 = dma.done.wait [#allocation4], 128  }
 0x2ed   :  { %678 = vsyncadd [#allocation4], 4294967168 }
 0x2ee   :  { %372 = vsyncpa [#allocation3], 1 }
 0x2ef   :  { %373 = vsyncpa [#allocation6], 1 }
 0x2f0   :  { %374 = vsyncpa [#allocation9], 1 }
 0x2f1   :  { %375 = vsyncpa [#allocation4], 1 }

</bundles_post_ra>
